<compile_context>
chip_gen: v7x
topology: tpu7x:2x2x1
jax: 0.10.0
libtpu: 0.0.40
codegen_flags: <defaults>
</compile_context>

<pallas_src>
import math

import jax
import jax.numpy as jnp
from jax.experimental import pallas as pl
from jax.experimental.pallas import tpu as pltpu

_SHIFT = math.log(2.0)
_LANES = 128
_TARGET_TILE_BYTES = 2 * 1024 * 1024  # ~2 MiB per tile per array


def _shifted_softplus_kernel(x_ref, o_ref):
    # Upcast to f32 for the transcendentals (EUP); casts hide under DMA.
    x = x_ref[...].astype(jnp.float32)
    # Numerically stable softplus: max(x, 0) + log1p(exp(-|x|))
    sp = jnp.maximum(x, 0.0) + jnp.log1p(jnp.exp(-jnp.abs(x)))
    o_ref[...] = (sp - _SHIFT).astype(o_ref.dtype)


def shifted_softplus(x: jax.Array) -> jax.Array:
    orig_shape = x.shape
    orig_dtype = x.dtype
    n = x.size
    if n == 0:
        return x

    itemsize = jnp.dtype(orig_dtype).itemsize
    # Multiple of 8 by construction (2 MiB / (128 * itemsize)).
    target_rows = max(8, _TARGET_TILE_BYTES // (_LANES * itemsize))

    # Pad only to lane granularity (128) when needed; aligned inputs take a
    # copy-free reshape path.
    rem = (-n) % _LANES
    x_flat = jnp.ravel(x)
    if rem:
        x_flat = jnp.pad(x_flat, (0, rem))
    rows = (n + rem) // _LANES
    x2d = x_flat.reshape(rows, _LANES)

    if rows <= target_rows:
        # Single block covering the full array dims (always a legal block shape).
        block_rows = rows
    else:
        # Multiple of 8; Pallas handles the ragged tail block automatically.
        block_rows = target_rows

    grid = (pl.cdiv(rows, block_rows),)
    out2d = pl.pallas_call(
        _shifted_softplus_kernel,
        out_shape=jax.ShapeDtypeStruct((rows, _LANES), orig_dtype),
        grid_spec=pl.GridSpec(
            grid=grid,
            in_specs=[pl.BlockSpec((block_rows, _LANES), lambda i: (i, 0))],
            out_specs=pl.BlockSpec((block_rows, _LANES), lambda i: (i, 0)),
        ),
        compiler_params=pltpu.CompilerParams(
            dimension_semantics=("parallel",),
        ),
    )(x2d)

    out_flat = out2d.reshape(-1)
    if rem:
        out_flat = out_flat[:n]
    return out_flat.reshape(orig_shape)


if __name__ == "__main__":
    key = jax.random.PRNGKey(0)

    # NCHW-like activation consistent with the module: (2, 4, 16, 16), f32.
    x = jax.random.normal(key, (2, 4, 16, 16), dtype=jnp.float32) * 3.0
    y = shifted_softplus(x)
    jax.block_until_ready(y)
    y_ref = jax.nn.softplus(x) - _SHIFT
    assert y.shape == x.shape and y.dtype == x.dtype
    assert jnp.allclose(y, y_ref, atol=1e-5, rtol=1e-5)

    # Ragged-size input (not a multiple of 128) exercises the tail/pad path.
    x2 = jax.random.normal(jax.random.PRNGKey(1), (3, 5, 7), dtype=jnp.float32) * 3.0
    y2 = shifted_softplus(x2)
    jax.block_until_ready(y2)
    y2_ref = jax.nn.softplus(x2) - _SHIFT
    assert y2.shape == x2.shape and y2.dtype == x2.dtype
    assert jnp.allclose(y2, y2_ref, atol=1e-5, rtol=1e-5)

    print("KERNEL_OK")
</pallas_src>

<mosaic_0001>
module attributes {stable_mosaic.version = 11 : i64} {
  func.func @_shifted_softplus_kernel(%arg0: i32, %arg1: memref<16x128xf32, #tpu.memory_space<vmem>>, %arg2: memref<16x128xf32, #tpu.memory_space<vmem>>) attributes {dimension_semantics = [#tpu.dimension_semantics<parallel>], iteration_bounds = array<i64: 1>, scalar_prefetch = 0 : i64, scratch_operands = 0 : i64, tpu.core_type = #tpu.core_type<tc>, window_params = [{transform_indices = @transform_0, window_bounds = array<i64: 16, 128>}, {transform_indices = @transform_1, window_bounds = array<i64: 16, 128>}]} {
    %c0 = arith.constant 0 : index
    %c0_0 = arith.constant 0 : index
    %0 = vector.load %arg1[%c0, %c0_0] : memref<16x128xf32, #tpu.memory_space<vmem>>, vector<16x128xf32>
    %cst = arith.constant 0.000000e+00 : f32
    %1 = vector.broadcast %cst : f32 to vector<16x128xf32>
    %2 = arith.maximumf %0, %1 : vector<16x128xf32>
    %3 = math.absf %0 : vector<16x128xf32>
    %cst_1 = arith.constant 0.000000e+00 : f32
    %4 = vector.broadcast %cst_1 : f32 to vector<16x128xf32>
    %5 = arith.subf %4, %3 : vector<16x128xf32>
    %6 = math.exp %5 : vector<16x128xf32>
    %7 = math.log1p %6 : vector<16x128xf32>
    %8 = arith.addf %2, %7 : vector<16x128xf32>
    %cst_2 = arith.constant 0.693147182 : f32
    %9 = vector.broadcast %cst_2 : f32 to vector<16x128xf32>
    %10 = arith.subf %8, %9 : vector<16x128xf32>
    %c0_3 = arith.constant 0 : index
    %c0_4 = arith.constant 0 : index
    %11 = vector.load %arg2[%c0_3, %c0_4] : memref<16x128xf32, #tpu.memory_space<vmem>>, vector<16x128xf32>
    tpu.vector_store %arg2[%c0_3, %c0_4], %10 {strides = array<i32>} : memref<16x128xf32, #tpu.memory_space<vmem>>, vector<16x128xf32>,
    return
  }
  func.func @transform_0(%arg0: i32) -> (i32, i32) {
    %c0_i32 = arith.constant 0 : i32
    %c0_i32_0 = arith.constant 0 : i32
    return %arg0, %c0_i32 : i32, i32
  }
  func.func @transform_1(%arg0: i32) -> (i32, i32) {
    %c0_i32 = arith.constant 0 : i32
    %c0_i32_0 = arith.constant 0 : i32
    return %arg0, %c0_i32 : i32, i32
  }
}

</mosaic_0001>

<bundles_post_ra>
// kernel: tpu_custom_call.1
= control target key start
LH: loop header
LB: loop body
LE: loop exit
PB: predicated region body
PF: predicated region fallthrough
CT: control target
= control target key end

     0   :  { %6 = vsyncpa [#allocation3], 0  ;;  %s182_s0 = inlined_call_operand.hbm [shape: f32[16,128], index: 0, kind: input, shape index: {}]   ;;  %s183_s1 = inlined_call_operand.hbm [shape: f32[16,128], index: 1, kind: output, shape index: {}]  }
   0x1   :  { %7 = vsyncpa [#allocation4], 0  ;;  %s138_s6 = smov [#allocation2]   ;;  %s90_s10 = scalar_lea.hbm %s182_s0, 256 }
   0x2   :  { %s13_s7 = sshll.u32 %s138_s6, 4  ;;  %p91_p0 = scmp.ne.s32.totalorder %s182_s0, %s90_s10  ;;  %s14_s7 = int_to_ptr.vmem [resolvable:$true] %s13_s7 }
   0x3   :  { %p94_p1 = scmp.lt.u32.totalorder %s90_s10, %s182_s0 }
   0x5   :  { %p96_p2 = pnand %p94_p1, %p91_p0 }
   0x7   :  { %99 = shalt.err (!%p96_p2)
}
   0x8   :  { %s100_s15 = scalar_lea.vmem %s14_s7, 256  ;;  %p105_p4 = scmp.lt.s32.totalorder %s14_s7, %s14_s7 }
   0x9   :  { %p101_p3 = scmp.ne.s32.totalorder %s14_s7, %s100_s15  ;;  %p106_p5 = scmp.lt.s32.totalorder %s100_s15, %s100_s15 }
   0xb   :  { %p107_p6 = por %p106_p5, %p105_p4 }
   0xd   :  { %p108_p7 = pnand %p107_p6, %p101_p3 }
   0xf   :  { %111 = shalt.err (!%p108_p7)
}
  0x10   :  { %s139_s16 = smov 128   ;;  %s140_s17 = smov 8  }
  0x11   :  { %19 = dma.hbm_to_vmem [thread:$0]  %s182_s0, 256, %s14_s7, [#allocation3], %s139_s16, %s139_s16, %s140_s17  }
  0x12   :  { %134 = dma.done.wait [#allocation3], 256  }
  0x13   :  { %135 = vsyncadd [#allocation3], 4294967040  ;;  %v23_v0 = vld [vmem:[#allocation2] sm:$0xff]  ;;  %v24_v1 = vld [vmem:[#allocation2 + $0x8] sm:$0xff]  ;;  %s141_s0 = smov [#allocation5]  }
  0x14   :  { %v27_v2 = vand.u32 2147483647, %v23_v0  ;;  %v28_v3 = vand.u32 2147483647, %v24_v1  ;;  %v25_v20 = vmax.f32 %v23_v0, 0.0  ;;  %v26_v24 = vmax.f32 %v24_v1, 0.0 }
  0x15   :  { %s64_s20 = sshll.u32 %s141_s0, 4  ;;  %s65_s20 = int_to_ptr.vmem [resolvable:$true] %s64_s20 }
  0x16   :  { %v29_v4 = vsub.f32 0.0, %v27_v2  ;;  %v30_v5 = vsub.f32 0.0, %v28_v3  ;;  %s112_s21 = scalar_lea.vmem %s65_s20, 256  ;;  %p117_p9 = scmp.lt.s32.totalorder %s65_s20, %s65_s20 }
  0x17   :  { %p113_p8 = scmp.ne.s32.totalorder %s65_s20, %s112_s21  ;;  %p118_p10 = scmp.lt.s32.totalorder %s112_s21, %s112_s21 }
  0x18   :  { %v31_v6 = vmul.f32 1.442695, %v29_v4  ;;  %v33_v7 = vmul.f32 1.442695, %v30_v5 }
  0x19   :  { %p119_p11 = por %p118_p10, %p117_p9 }
  0x1a   :  { %82 = vpow2.f32 %v31_v6 }
  0x1b   :  { %84 = vpow2.f32 %v33_v7  ;;  %p120_p12 = pnand %p119_p11, %p113_p8 }
  0x24   :  { %v83_v8 = vpop.eup %82 }
  0x25   :  { %v85_v9 = vpop.eup %84  ;;  %v35_v10 = vadd.f32 1.0, %v83_v8  ;;  %v38_v12 = vmul.f32 -0.5, %v83_v8  ;;  %v41_v15 = vand.u32 2147483647, %v83_v8 }
  0x26   :  { %v44_v11 = vadd.f32 1.0, %v85_v9  ;;  %v47_v13 = vmul.f32 -0.5, %v85_v9  ;;  %v50_v17 = vand.u32 2147483647, %v85_v9 }
  0x27   :  { %86 = vlog2.f32 %v35_v10  ;;  %v39_v14 = vadd.f32 1.0, %v38_v12  ;;  %vm42_vm0 = vcmp.lt.f32.partialorder %v41_v15, 0.0004427343 }
  0x28   :  { %88 = vlog2.f32 %v44_v11  ;;  %v48_v16 = vadd.f32 1.0, %v47_v13  ;;  %vm51_vm1 = vcmp.lt.f32.partialorder %v50_v17, 0.0004427343 }
  0x29   :  { %v40_v18 = vmul.f32 %v83_v8, %v39_v14 }
  0x2a   :  { %v49_v21 = vmul.f32 %v85_v9, %v48_v16 }
  0x31   :  { %v87_v19 = vpop.eup %86 }
  0x32   :  { %v89_v22 = vpop.eup %88  ;;  %v37_v23 = vmul.f32 0.6931472, %v87_v19 }
  0x33   :  { %v46_v25 = vmul.f32 0.6931472, %v89_v22 }
  0x34   :  { %v43_v26 = vsel %vm42_vm0, %v40_v18, %v37_v23 }
  0x35   :  { %v53_v27 = vadd.f32 %v43_v26, %v25_v20  ;;  %v52_v28 = vsel %vm51_vm1, %v49_v21, %v46_v25 }
  0x36   :  { %v54_v29 = vadd.f32 %v52_v28, %v26_v24 }
  0x37   :  { %v76_v30 = vadd.f32 -0.6931472, %v53_v27 }
  0x38   :  { %v77_v31 = vadd.f32 -0.6931472, %v54_v29 }
  0x39   :  { %57 = vst [vmem:[#allocation5] sm:$0xff] %v76_v30 }
  0x3a   :  { %58 = vst [vmem:[#allocation5 + $0x8] sm:$0xff] %v77_v31 }
  0x3b   :  { %123 = shalt.err (!%p120_p12)
}
  0x3c   :  { %s124_s24 = scalar_lea.hbm %s183_s1, 256 }
  0x3d   :  { %p125_p13 = scmp.ne.s32.totalorder %s183_s1, %s124_s24  ;;  %p128_p0 = scmp.lt.u32.totalorder %s124_s24, %s183_s1 }
  0x3f   :  { %p130_p1 = pnand %p128_p0, %p125_p13 }
  0x41   :  { %133 = shalt.err (!%p130_p1)
}
  0x42   :  { %70 = dma.vmem_to_hbm [thread:$0]  %s65_s20, 256, %s183_s1, [#allocation4], %s139_s16, %s139_s16, %s140_s17  }
  0x43   :  { %136 = dma.done.wait [#allocation4], 256  }
  0x44   :  { %137 = vsyncadd [#allocation4], 4294967040 }
  0x45   :  { %74 = vsyncpa [#allocation3], 1 }
  0x46   :  { %75 = vsyncpa [#allocation4], 1 }

</bundles_post_ra>
